<compile_context>
chip_gen: v5e
topology: v5e:2x2
jax: 0.10.0
libtpu: 0.0.40
codegen_flags: <defaults>
</compile_context>

<pallas_src>
import functools

import jax
import jax.numpy as jnp
from jax.experimental import pallas as pl
from jax.experimental.pallas import tpu as pltpu


# --------------------------------------------------------------------------
# Parameter (buffer) construction — glue, plain JAX, deterministic.
# --------------------------------------------------------------------------
def build_pe(max_len: int, d_model: int) -> jnp.ndarray:
    """Reproduces the (quirky-but-faithful) double loop from __init__."""
    assert d_model % 2 == 0
    pos = jnp.arange(max_len, dtype=jnp.float32)[:, None]           # (L, 1)
    i_even = jnp.arange(0, d_model, 2, dtype=jnp.float32)[None, :]  # even cols
    i_odd = i_even + 1.0                                             # odd cols
    sin_part = jnp.sin(pos / jnp.power(10000.0, 2.0 * i_even / d_model))
    cos_part = jnp.cos(pos / jnp.power(10000.0, 2.0 * i_odd / d_model))
    pe = jnp.stack([sin_part, cos_part], axis=-1).reshape(max_len, d_model)
    return pe.astype(jnp.float32)                                    # (L, D)


# --------------------------------------------------------------------------
# Pallas kernel: lane-dense (tR, 128) tiles, fused (x + pe) and dropout.
# --------------------------------------------------------------------------
def _pe_dropout_kernel(seed_ref, x_ref, pe_ref, o_ref, *,
                       p, training, total_rows, row_tile):
    # x_ref / o_ref: (row_tile, 128) tile of batch b (batch dim squeezed).
    # pe_ref:        (row_tile, 128) shared tile (resident across batch loop).
    y = x_ref[...].astype(jnp.float32) + pe_ref[...].astype(jnp.float32)

    if training and p > 0.0:
        if p >= 1.0:
            y = jnp.zeros_like(y)
        else:
            j = pl.program_id(0)          # row-tile index
            b = pl.program_id(1)          # batch index
            seed = seed_ref[0]
            # Global flat element index (within the padded (B, R, 128) view).
            # TODO(synk): int32 index overflows for > 2**31 elements; fine here.
            rows = jax.lax.broadcasted_iota(jnp.int32, y.shape, 0)
            lanes = jax.lax.broadcasted_iota(jnp.int32, y.shape, 1)
            base = (b * total_rows + j * row_tile) * 128
            h = base + rows * 128 + lanes + seed * jnp.int32(0x632BE59B)
            # lowbias32-style integer mixer (pure VPU ops; portable to
            # interpret mode — no pltpu.prng_* needed).
            # (h >> 16) & 0xFFFF emulates a logical right shift on int32.
            h = h ^ ((h >> 16) & jnp.int32(0xFFFF))
            h = h * jnp.int32(0x045D9F3B)
            h = h ^ ((h >> 16) & jnp.int32(0xFFFF))
            h = h * jnp.int32(0x045D9F3B)
            h = h ^ ((h >> 16) & jnp.int32(0xFFFF))
            # Uniform in [0, 1) from the low 23 bits.
            u = (h & jnp.int32(0x7FFFFF)).astype(jnp.float32) * jnp.float32(
                1.0 / float(1 << 23))
            keep = u >= jnp.float32(p)
            y = jnp.where(keep, y * jnp.float32(1.0 / (1.0 - p)), 0.0)

    o_ref[...] = y.astype(o_ref.dtype)


# --------------------------------------------------------------------------
# Wrapper: reshape to lane-dense view, build grid, call pallas.
# --------------------------------------------------------------------------
def temporal_positional_encoding(x, pe, *, dropout_p=0.3, training=True,
                                 lookup_index=None, seed=0):
    """x: (B, T, D). pe: (max_len, D). Returns (B, T, D)."""
    # TODO(synk): the module docstring advertises 4-D (B, N, T, F) inputs but
    # the buffer add only broadcasts cleanly for the standard (B, T, D) usage,
    # which is what we implement.
    B, T, D = x.shape
    if lookup_index is not None:
        pe_slice = pe[jnp.asarray(lookup_index, dtype=jnp.int32)]    # (T, D)
    else:
        pe_slice = pe[:T]                                            # (T, D)
    pe_slice = pe_slice.astype(jnp.float32)

    # Flatten (T, D) -> lane-dense rows of 128 so every store is a full vst.
    L = T * D
    pad = (-L) % 128
    Lp = L + pad
    R = Lp // 128

    xf = x.reshape(B, L)
    pf = pe_slice.reshape(1, L)
    if pad:
        xf = jnp.pad(xf, ((0, 0), (0, pad)))
        pf = jnp.pad(pf, ((0, 0), (0, pad)))
    x3 = xf.reshape(B, R, 128)          # (B, R, 128)
    pe2 = pf.reshape(R, 128)            # (R, 128)

    # Row-tile: up to 1024 sublanes -> 512 KiB per f32 buffer; with in + out +
    # pe double-buffered that is ~3 MiB of VMEM, safe on v5e/v6e/v7x.
    ROW_CAP = 1024
    tR = R if R <= ROW_CAP else ROW_CAP
    nR = pl.cdiv(R, tR)

    seed_arr = jnp.array([seed], dtype=jnp.int32)

    kernel = functools.partial(_pe_dropout_kernel,
                               p=float(dropout_p),
                               training=bool(training),
                               total_rows=R,
                               row_tile=tR)

    # Grid = (row_tiles, B); batch is the fastest axis so the pe tile (whose
    # block index ignores b) stays resident and is fetched once per row tile.
    grid_spec = pltpu.PrefetchScalarGridSpec(
        num_scalar_prefetch=1,                         # seed -> SMEM
        grid=(nR, B),
        in_specs=[
            pl.BlockSpec((None, tR, 128), lambda j, b, seed: (b, j, 0)),  # x
            pl.BlockSpec((tR, 128),       lambda j, b, seed: (j, 0)),     # pe
        ],
        out_specs=pl.BlockSpec((None, tR, 128), lambda j, b, seed: (b, j, 0)),
    )

    out3 = pl.pallas_call(
        kernel,
        out_shape=jax.ShapeDtypeStruct((B, R, 128), x.dtype),
        grid_spec=grid_spec,
        compiler_params=pltpu.CompilerParams(
            dimension_semantics=("parallel", "parallel")),
    )(seed_arr, x3, pe2)

    out = out3.reshape(B, Lp)
    if pad:
        out = out[:, :L]
    return out.reshape(B, T, D)


# --------------------------------------------------------------------------
if __name__ == "__main__":
    B, T, D = 2, 8, 32
    max_len = 500
    dropout_p = 0.3

    key = jax.random.PRNGKey(0)
    x = jax.random.normal(key, (B, T, D), dtype=jnp.float32)

    pe = build_pe(max_len, D)
    ref = x + pe[:T][None, :, :]

    # Eval-mode check (dropout = identity): must equal x + pe[:T].
    y_eval = temporal_positional_encoding(x, pe, dropout_p=dropout_p,
                                          training=False)
    y_eval = jax.block_until_ready(y_eval)
    assert y_eval.shape == (B, T, D)
    assert jnp.allclose(y_eval, ref, atol=1e-5, rtol=1e-5), "eval-mode mismatch"

    # Training-mode run (stochastic dropout fused inside the kernel).
    y_train = temporal_positional_encoding(x, pe, dropout_p=dropout_p,
                                           training=True, seed=0)
    y_train = jax.block_until_ready(y_train)
    assert y_train.shape == (B, T, D) and y_train.dtype == x.dtype

    # Every surviving element equals (x + pe) / (1 - p); dropped elements are 0.
    scaled_ref = ref / (1.0 - dropout_p)
    zero_mask = jnp.isclose(y_train, 0.0, atol=1e-6)
    ok = jnp.logical_or(zero_mask,
                        jnp.isclose(y_train, scaled_ref, atol=1e-4, rtol=1e-4))
    assert bool(jnp.all(ok)), "training-mode dropout values inconsistent"

    # Drop rate sanity check (p = 0.3; very generous bounds).
    drop_frac = float(jnp.mean(zero_mask.astype(jnp.float32)))
    assert 0.05 < drop_frac < 0.6, f"implausible dropout rate {drop_frac}"

    print("KERNEL_OK")
</pallas_src>

<mosaic_0001>
module attributes {stable_mosaic.version = 11 : i64} {
  func.func @_pe_dropout_kernel(%arg0: i32, %arg1: i32, %arg2: memref<1xi32, #tpu.memory_space<smem>>, %arg3: memref<1x2x128xf32, #tpu.memory_space<vmem>>, %arg4: memref<2x128xf32, #tpu.memory_space<vmem>>, %arg5: memref<1x2x128xf32, #tpu.memory_space<vmem>>) attributes {dimension_semantics = [#tpu.dimension_semantics<parallel>, #tpu.dimension_semantics<parallel>], iteration_bounds = array<i64: 1, 2>, scalar_prefetch = 1 : i64, scratch_operands = 0 : i64, tpu.core_type = #tpu.core_type<tc>, window_params = [{transform_indices = @transform_0, window_bounds = array<i64: 1, 2, 128>}, {transform_indices = @transform_1, window_bounds = array<i64: 2, 128>}, {transform_indices = @transform_2, window_bounds = array<i64: 1, 2, 128>}]} {
    %c0 = arith.constant 0 : index
    %c0_0 = arith.constant 0 : index
    %c0_1 = arith.constant 0 : index
    %0 = vector.load %arg3[%c0, %c0_0, %c0_1] : memref<1x2x128xf32, #tpu.memory_space<vmem>>, vector<1x2x128xf32>
    %1 = vector.shape_cast %0 : vector<1x2x128xf32> to vector<2x128xf32>
    %c0_2 = arith.constant 0 : index
    %c0_3 = arith.constant 0 : index
    %2 = vector.load %arg4[%c0_2, %c0_3] : memref<2x128xf32, #tpu.memory_space<vmem>>, vector<2x128xf32>
    %3 = arith.addf %1, %2 : vector<2x128xf32>
    %c0_4 = arith.constant 0 : index
    %c0_5 = arith.constant 0 : index
    %c0_6 = arith.constant 0 : index
    %4 = vector.load %arg5[%c0_4, %c0_5, %c0_6] : memref<1x2x128xf32, #tpu.memory_space<vmem>>, vector<1x2x128xf32>
    %5 = vector.shape_cast %4 : vector<1x2x128xf32> to vector<2x128xf32>
    %6 = vector.shape_cast %3 : vector<2x128xf32> to vector<1x2x128xf32>
    tpu.vector_store %arg5[%c0_4, %c0_5, %c0_6], %6 {strides = array<i32>} : memref<1x2x128xf32, #tpu.memory_space<vmem>>, vector<1x2x128xf32>,
    return
  }
  func.func @transform_0(%arg0: i32, %arg1: i32, %arg2: memref<1xi32, #tpu.memory_space<smem>>) -> (i32, i32, i32) {
    %c0_i32 = arith.constant 0 : i32
    %c0_i32_0 = arith.constant 0 : i32
    return %arg1, %arg0, %c0_i32 : i32, i32, i32
  }
  func.func @transform_1(%arg0: i32, %arg1: i32, %arg2: memref<1xi32, #tpu.memory_space<smem>>) -> (i32, i32) {
    %c0_i32 = arith.constant 0 : i32
    %c0_i32_0 = arith.constant 0 : i32
    return %arg0, %c0_i32 : i32, i32
  }
  func.func @transform_2(%arg0: i32, %arg1: i32, %arg2: memref<1xi32, #tpu.memory_space<smem>>) -> (i32, i32, i32) {
    %c0_i32 = arith.constant 0 : i32
    %c0_i32_0 = arith.constant 0 : i32
    return %arg1, %arg0, %c0_i32 : i32, i32, i32
  }
}

</mosaic_0001>

<bundles_post_ra>
// kernel: tpu_custom_call.1
= control target key start
LH: loop header
LB: loop body
LE: loop exit
PB: predicated region body
PF: predicated region fallthrough
CT: control target
= control target key end

     0   :  { %9 = vsyncpa [#allocation5], 0  ;;  %s646_s0 = inlined_call_operand.<no memory space> [shape: s32[1], index: 0, kind: input, shape index: {}]   ;;  %s647_s1 = inlined_call_operand.hbm [shape: f32[2,2,128], index: 1, kind: input, shape index: {}]   ;;  %s648_s2 = inlined_call_operand.vmem [shape: f32[2,128], index: 2, kind: input, shape index: {}]   ;;  %s649_s3 = inlined_call_operand.hbm [shape: f32[2,2,128], index: 3, kind: output, shape index: {}]  }
   0x1   :  { %11 = vsyncpa [#allocation5 + $0x1], 0 }
   0x2   :  { %12 = vsyncpa [#allocation6], 0 }
   0x3   :  { %14 = vsyncpa [#allocation6 + $0x1], 0  ;;  %s523_s12 = smov 0   ;;  %s525_s13 = smov 0  }
   0x4   :  { %s527_s14 = smov 0   ;;  %s529_s0 = smov 0  }
   0x5   :  { %s531_s15 = smov 0   ;;  %s533_s16 = smov 0  }
   0x6 LB: > { %s313_s17 = sadd.s32 4294967295, %s501_s16   ;;  %s314_s18 = sadd.s32 4294967294, %s501_s16   ;;  %s501_s16 = sphi %s533_s16, %s20_s16   ;;  %s497_s15 = sphi %s531_s15, %s658_s15   ;;  %s493_s0 = sphi %s529_s0, %s657_s0   ;;  %s489_s14 = sphi %s527_s14, %s656_s14   ;;  %s485_s13 = sphi %s525_s13, %s655_s13   ;;  %s481_s12 = sphi %s523_s12, %s654_s12  }
   0x7   : > { %s29_s19 = sadd.s32 1, %s497_s15  ;;  %s41_s20 = sadd.s32 1, %s489_s14 }
   0x8   : > { %p30_p0 = scmp.ge.s32.totalorder %s29_s19, 2  ;;  %p48_p1 = scmp.ne.s32.totalorder %s489_s14, %s485_s13 }
   0x9   : > { %p49_p2 = scmp.eq.s32.totalorder %s501_s16, 0  ;;  %p54_p3 = scmp.ne.s32.totalorder %s485_s13, %s481_s12 }
   0xa   : > { %s660_s19 = smov (%p30_p0, %s29_s19), 0  ;;  %p55_p5 = scmp.eq.s32.totalorder %s313_s17, 0 }
   0xb   : > { %p564_p4 = por %p49_p2, %p48_p1  ;;  %s36_s22 = ssub.s32 %s497_s15, %s660_s19 }
   0xc   : > { %p106_p6 = scmp.eq.s32.totalorder %s313_s17, 1  ;;  %p39_p7 = scmp.eq.s32.totalorder %s36_s22, 0 }
   0xd   : > { %p570_p8 = por %p55_p5, %p54_p3  ;;  %p112_p10 = scmp.eq.s32.totalorder %s314_s18, 1 }
   0xe   : > { %p574_p9 = por %p106_p6, %p48_p1  ;;  %p317_p12 = scmp.ge.s32.totalorder %s501_s16, 2 }
   0xf   : > { %s579_s25 = scalar_select %p39_p7, %s489_s14, %s41_s20  }
  0x10   : > { %p581_p11 = por %p112_p10, %p54_p3  ;;  %p339_p13 = scmp.lt.s32.totalorder %s501_s16, 2 }
  0x11   : > { %s139_s27 = sand.u32 1, %s489_s14   ;;  %s319_s29 = sshll.u32 %s497_s15, 1 }
  0x12   : > { %s318_s28 = sshll.u32 %s139_s27, 1  ;;  %s148_s5 = scalar_lea.hbm %s647_s1, %s319_s29 }
  0x13   : > { %s143_s6 = scalar_lea.vmem [#allocation4], %s318_s28  ;;  %s150_s8 = sshll.u32 %s148_s5, 4  ;;  %s151_s8 = int_to_ptr.hbm [resolvable:$true] %s150_s8 }
  0x14   : > { %s152_s7 = sshll.u32 %s143_s6, 4  ;;  %p332_p0 = pnand %p339_p13, %p564_p4  ;;  %s153_s7 = int_to_ptr.vmem [resolvable:$true] %s152_s7 }
  0x15   : > { %p320_p1 = scmp.ge.s32.totalorder %s501_s16, 1  ;;  %p157_p2 = scmp.lt.s32.totalorder %s501_s16, 3 }
  0x16   : > { %s140_s9 = scalar_lea.sflag [#allocation5], %s139_s27 }
  0x17   : > { %334 = dma.hbm_to_vmem [thread:$0]  (!%p332_p0), %s151_s8, 32, %s153_s7, %s140_s9  }
  0x18   : > { %p158_p3 = pnand %p320_p1, %p157_p2 }
  0x19   : > { %s597_s10 = sand.u32 (!%p158_p3), 1, %s485_s13  }
  0x1a   : > { %161 = sbr.rel (%p158_p3) target bundleno = 47 (0x2f), region = 28  ;;  %s321_s11 = sshll.u32 (!%p158_p3), %s597_s10, 1 }
  0x1b   : > { %s164_s17 = scalar_lea.sflag (!%p158_p3), [#allocation5], %s597_s10  ;;  %s167_s18 = scalar_lea.vmem (!%p158_p3), [#allocation4], %s321_s11 }
  0x1f   : > { %472 = dma.done.wait (%p570_p8), %s164_s17, 32  }
  0x20   : > { %474 = vsyncadd (%p570_p8), %s164_s17, 4294967264  ;;  %s324_s20 = sshll.u32 %s493_s0, 1  ;;  %s192_s28 = scalar_lea.vmem [#allocation7], %s321_s11  ;;  %v197_v0 = vld [vmem:[%s167_s18] sm:$0x3] }
  0x21   : > { %s213_s27 = scalar_lea.hbm %s649_s3, %s324_s20  ;;  %s215_s29 = sshll.u32 %s192_s28, 4  ;;  %v198_v1 = vld [vmem:[%s648_s2] sm:$0x3]  ;;  %s216_s29 = int_to_ptr.vmem [resolvable:$true] %s215_s29 }
  0x22   : > { %s217_s30 = sshll.u32 %s213_s27, 4  ;;  %v199_v2 = vadd.f32 %v198_v1, %v197_v0  ;;  %s202_s23 = scalar_lea.sflag [#allocation6], %s597_s10  ;;  %s218_s30 = int_to_ptr.hbm [resolvable:$true] %s217_s30 }
  0x23   : > { %s433_s6 = sshra.s32 %s218_s30, 4  ;;  %s439_s9 = scalar_lea.hbm %s649_s3, 4  ;;  %s434_s6 = int_to_ptr.hbm [resolvable:$true] %s433_s6 }
  0x24   : > { %200 = vst [vmem:[%s192_s28] sm:$0x3] %v199_v2  ;;  %s435_s0 = scalar_lea.hbm %s434_s6, 2  ;;  %p440_p7 = scmp.lt.s32.totalorder %s434_s6, %s649_s3 }
  0x25   : > { %p436_p4 = scmp.ne.s32.totalorder %s434_s6, %s435_s0  ;;  %p441_p8 = scmp.lt.s32.totalorder %s439_s9, %s435_s0 }
  0x27   : > { %p437_p5 = pnand %p436_p4, %p574_p9  ;;  %p442_p10 = por %p441_p8, %p440_p7 }
  0x29   : > { %p438_p6 = pneg %p437_p5 }
  0x2b   : > { %p443_p13 = pnand %p442_p10, %p438_p6 }
  0x2d   : > { %446 = shalt.err (!%p443_p13)
}
  0x2e   : > { %329 = dma.vmem_to_hbm [thread:$0]  (%p574_p9), %s216_s29, 32, %s218_s30, %s202_s23  }
  0x2f PF: > { %s229_s10 = sand.u32 1, %s481_s12   ;;  %p336_p0 = pnand %p317_p12, %p581_p11 }
  0x30   : > { %s230_s18 = scalar_lea.sflag [#allocation6], %s229_s10 }
  0x31   : > { %p337_p1 = pneg %p336_p0 }
  0x33   : > { %476 = dma.done.wait (%p337_p1), %s230_s18, 32  }
  0x34   : > { %478 = vsyncadd (%p337_p1), %s230_s18, 4294967264  ;;  %s20_s16 = sadd.s32 1, %s501_s16   ;;  %s654_s12 = smov %s485_s13 }
  0x35   : > { %p17_p2 = scmp.ge.s32.totalorder %s20_s16, 4   ;;  %s655_s13 = smov %s489_s14 }
  0x36   : > { %s656_s14 = smov %s579_s25  ;;  %s657_s0 = smov %s497_s15 }
  0x37   : > { %s658_s15 = smov %s660_s19  ;;  %19 = sbr.rel (!%p17_p2) target bundleno = 6 (0x6), region = 76 }
  0x3c   :  { %236 = vsyncpa [#allocation5], 1 }
  0x3d   :  { %238 = vsyncpa [#allocation5 + $0x1], 1 }
  0x3e   :  { %239 = vsyncpa [#allocation6], 1 }
  0x3f   :  { %241 = vsyncpa [#allocation6 + $0x1], 1 }

</bundles_post_ra>
